<compile_context>
chip_gen: v6e
topology: v6e:2x2x1
jax: 0.10.0
libtpu: 0.0.40
codegen_flags: <defaults>
</compile_context>

<pallas_src>
import functools

import jax
import jax.numpy as jnp
from jax.experimental import pallas as pl
from jax.experimental.pallas import tpu as pltpu


def _round_up(a: int, m: int) -> int:
    return ((a + m - 1) // m) * m


def _graphnorm_kernel(x_ref, wt_ref, b_ref, colsum_ref, o_ref, stats_ref, *,
                      n_elem: float):
    """grid = (pass, row_tile).  stats_ref: SMEM (2,) f32 = [sum, sumsq]."""
    p = pl.program_id(0)
    i = pl.program_id(1)

    @pl.when(jnp.logical_and(p == 0, i == 0))
    def _init():
        stats_ref[0] = 0.0
        stats_ref[1] = 0.0

    @pl.when(p == 0)
    def _reduce():
        # One read of x per tile; both partials in f32.
        xf = x_ref[...].astype(jnp.float32)
        stats_ref[0] = stats_ref[0] + jnp.sum(xf)
        stats_ref[1] = stats_ref[1] + jnp.sum(xf * xf)

    @pl.when(p == 1)
    def _matmul():
        s = stats_ref[0]
        ss = stats_ref[1]
        mean = s / n_elem
        var = jnp.maximum(ss / n_elem - mean * mean, 0.0)
        rstd = 1.0 / (jnp.sqrt(var) + 1e-10)          # single scalar recip

        # Fold normalization into the (tiny) weight / bias instead of the
        # (TM x in_size) activation block:
        #   (x - mean)*rstd @ Wt + b == x @ (rstd*Wt) + (b - mean*rstd*colsum(Wt))
        x_blk = x_ref[...]
        wt_s = wt_ref[...] * rstd
        if x_blk.dtype != jnp.float32:
            wt_s = wt_s.astype(x_blk.dtype)           # keep bf16 x un-upcast for MXU
        b_adj = b_ref[...] - (mean * rstd) * colsum_ref[...]

        y = jnp.dot(x_blk, wt_s, preferred_element_type=jnp.float32) + b_adj
        o_ref[...] = y.astype(o_ref.dtype)


def graph_normalization(x, v, g, b, *, tm: int = 512):
    """x: (N, in_size); v: (out_size, in_size); g: (out_size,); b: (out_size,)."""
    n, in_size = x.shape
    out_size = v.shape[0]

    # weight_norm(nn.Linear) with default dim=0: W[i,:] = g[i] * v[i,:] / ||v[i,:]||_2
    # (parameter setup glue, stays in plain JAX — O(in*out), done once)
    vf = v.astype(jnp.float32)
    row_norm = jnp.sqrt(jnp.sum(vf * vf, axis=1, keepdims=True))
    w = (g.astype(jnp.float32)[:, None] / row_norm) * vf    # (out_size, in_size)
    wt = w.T                                                 # (in_size, out_size)

    # Lane-dense output: pad out dim to a multiple of 128 with zero columns.
    out_pad = pl.cdiv(out_size, 128) * 128
    wt_p = jnp.zeros((in_size, out_pad), jnp.float32).at[:, :out_size].set(wt)
    b_p = jnp.zeros((1, out_pad), jnp.float32).at[0, :out_size].set(
        b.astype(jnp.float32))
    colsum_p = jnp.sum(wt_p, axis=0, keepdims=True)          # (1, out_pad), param-only

    # Row tiling: tile height multiple of 8, N padded with zero rows (safe:
    # zero rows add nothing to sum/sumsq and padded outputs are sliced off).
    tm_eff = min(tm, _round_up(n, 8))
    n_pad = _round_up(n, tm_eff)
    x_p = x if n_pad == n else (
        jnp.zeros((n_pad, in_size), x.dtype).at[:n].set(x))
    n_tiles = n_pad // tm_eff

    kernel = functools.partial(_graphnorm_kernel, n_elem=float(n * in_size))

    out = pl.pallas_call(
        kernel,
        out_shape=jax.ShapeDtypeStruct((n_pad, out_pad), x.dtype),
        grid=(2, n_tiles),
        in_specs=[
            pl.BlockSpec((tm_eff, in_size), lambda p, i: (i, 0)),   # x tiles
            pl.BlockSpec((in_size, out_pad), lambda p, i: (0, 0)),  # Wt (resident)
            pl.BlockSpec((1, out_pad), lambda p, i: (0, 0)),        # bias (resident)
            pl.BlockSpec((1, out_pad), lambda p, i: (0, 0)),        # colsum (resident)
        ],
        out_specs=pl.BlockSpec((tm_eff, out_pad), lambda p, i: (i, 0)),
        scratch_shapes=[pltpu.SMEM((2,), jnp.float32)],
        compiler_params=pltpu.CompilerParams(
            # Global-stats accumulation in shared SMEM scratch + output revisit
            # across the pass axis -> both axes must stay "arbitrary".
            dimension_semantics=("arbitrary", "arbitrary")),
    )(x_p, wt_p, b_p, colsum_p)

    return out[:n, :out_size]


if __name__ == "__main__":
    # Small shapes consistent with the module: N nodes x in_size features.
    # N=40 is deliberately not a tile multiple and tm=16 forces several row
    # tiles, exercising padding + the two-pass reduction + lane-dense padding.
    N, IN_SIZE, OUT_SIZE = 40, 32, 32

    key = jax.random.PRNGKey(0)
    kx, kv, kg, kb = jax.random.split(key, 4)

    x = jax.random.normal(kx, (N, IN_SIZE), dtype=jnp.float32)
    v = jax.random.normal(kv, (OUT_SIZE, IN_SIZE), dtype=jnp.float32) * 0.1
    g = jax.random.uniform(kg, (OUT_SIZE,), dtype=jnp.float32, minval=0.5, maxval=1.5)
    b = jax.random.normal(kb, (OUT_SIZE,), dtype=jnp.float32) * 0.01

    out = graph_normalization(x, v, g, b, tm=16)
    jax.block_until_ready(out)

    # Pure-JAX reference of the same math (matches the PyTorch forward).
    mean = jnp.mean(jnp.mean(x, axis=1, keepdims=True), axis=0, keepdims=True)
    var = jnp.sum(jnp.sum((x - mean) ** 2, axis=1, keepdims=True), axis=0,
                  keepdims=True) / (x.shape[0] * x.shape[1])
    xn = (x - mean) / (jnp.sqrt(var) + 1e-10)
    row_norm = jnp.sqrt(jnp.sum(v * v, axis=1, keepdims=True))
    w_eff = (g[:, None] / row_norm) * v
    ref = xn @ w_eff.T + b[None, :]

    assert out.shape == ref.shape, f"shape mismatch {out.shape} vs {ref.shape}"
    assert jnp.allclose(out, ref, atol=1e-4, rtol=1e-4), "mismatch vs reference"

    print("KERNEL_OK")
</pallas_src>

<mosaic_0001>
module attributes {stable_mosaic.version = 11 : i64} {
  func.func @_graphnorm_kernel(%arg0: i32, %arg1: i32, %arg2: memref<16x32xf32, #tpu.memory_space<vmem>>, %arg3: memref<32x128xf32, #tpu.memory_space<vmem>>, %arg4: memref<1x128xf32, #tpu.memory_space<vmem>>, %arg5: memref<1x128xf32, #tpu.memory_space<vmem>>, %arg6: memref<16x128xf32, #tpu.memory_space<vmem>>, %arg7: memref<2xf32, #tpu.memory_space<smem>>) attributes {dimension_semantics = [#tpu.dimension_semantics<arbitrary>, #tpu.dimension_semantics<arbitrary>], iteration_bounds = array<i64: 2, 3>, scalar_prefetch = 0 : i64, scratch_operands = 1 : i64, tpu.core_type = #tpu.core_type<tc>, window_params = [{transform_indices = @transform_0, window_bounds = array<i64: 16, 32>}, {pipeline_mode = #tpu.pipeline_mode<synchronous>, transform_indices = @transform_1, window_bounds = array<i64: 32, 128>}, {pipeline_mode = #tpu.pipeline_mode<synchronous>, transform_indices = @transform_2, window_bounds = array<i64: 1, 128>}, {pipeline_mode = #tpu.pipeline_mode<synchronous>, transform_indices = @transform_3, window_bounds = array<i64: 1, 128>}, {transform_indices = @transform_4, window_bounds = array<i64: 16, 128>}]} {
    %c0_i32 = arith.constant 0 : i32
    %0 = arith.cmpi eq, %arg0, %c0_i32 : i32
    %c0_i32_0 = arith.constant 0 : i32
    %1 = arith.cmpi eq, %arg1, %c0_i32_0 : i32
    %2 = arith.andi %0, %1 : i1
    %3 = arith.extui %2 : i1 to i32
    %c0_i32_1 = arith.constant 0 : i32
    %4 = arith.cmpi ne, %3, %c0_i32_1 : i32
    scf.if %4 {
      %cst = arith.constant 0.000000e+00 : f32
      %c0 = arith.constant 0 : index
      %11 = memref.load %arg7[%c0] : memref<2xf32, #tpu.memory_space<smem>>
      memref.store %cst, %arg7[%c0] : memref<2xf32, #tpu.memory_space<smem>>
      %cst_5 = arith.constant 0.000000e+00 : f32
      %c1 = arith.constant 1 : index
      %12 = memref.load %arg7[%c1] : memref<2xf32, #tpu.memory_space<smem>>
      memref.store %cst_5, %arg7[%c1] : memref<2xf32, #tpu.memory_space<smem>>
    } else {
    }
    %c0_i32_2 = arith.constant 0 : i32
    %5 = arith.cmpi eq, %arg0, %c0_i32_2 : i32
    %6 = arith.extui %5 : i1 to i32
    %c0_i32_3 = arith.constant 0 : i32
    %7 = arith.cmpi ne, %6, %c0_i32_3 : i32
    scf.if %7 {
      %c0 = arith.constant 0 : index
      %c0_5 = arith.constant 0 : index
      %11 = vector.load %arg2[%c0, %c0_5] : memref<16x32xf32, #tpu.memory_space<vmem>>, vector<16x32xf32>
      %c0_6 = arith.constant 0 : index
      %12 = memref.load %arg7[%c0_6] : memref<2xf32, #tpu.memory_space<smem>>
      %13 = vector.shape_cast %11 : vector<16x32xf32> to vector<1x16x32xf32>
      %cst = arith.constant dense<0.000000e+00> : vector<1xf32>
      %14 = vector.multi_reduction <add>, %13, %cst [1, 2] : vector<1x16x32xf32> to vector<1xf32>
      %15 = vector.shape_cast %14 : vector<1xf32> to vector<1x1x1xf32>
      %16 = vector.extract %15[0, 0, 0] : f32 from vector<1x1x1xf32>
      %17 = arith.addf %12, %16 : f32
      %c0_7 = arith.constant 0 : index
      %18 = memref.load %arg7[%c0_7] : memref<2xf32, #tpu.memory_space<smem>>
      memref.store %17, %arg7[%c0_7] : memref<2xf32, #tpu.memory_space<smem>>
      %c1 = arith.constant 1 : index
      %19 = memref.load %arg7[%c1] : memref<2xf32, #tpu.memory_space<smem>>
      %20 = arith.mulf %11, %11 : vector<16x32xf32>
      %21 = vector.shape_cast %20 : vector<16x32xf32> to vector<1x16x32xf32>
      %cst_8 = arith.constant dense<0.000000e+00> : vector<1xf32>
      %22 = vector.multi_reduction <add>, %21, %cst_8 [1, 2] : vector<1x16x32xf32> to vector<1xf32>
      %23 = vector.shape_cast %22 : vector<1xf32> to vector<1x1x1xf32>
      %24 = vector.extract %23[0, 0, 0] : f32 from vector<1x1x1xf32>
      %25 = arith.addf %19, %24 : f32
      %c1_9 = arith.constant 1 : index
      %26 = memref.load %arg7[%c1_9] : memref<2xf32, #tpu.memory_space<smem>>
      memref.store %25, %arg7[%c1_9] : memref<2xf32, #tpu.memory_space<smem>>
    } else {
    }
    %c1_i32 = arith.constant 1 : i32
    %8 = arith.cmpi eq, %arg0, %c1_i32 : i32
    %9 = arith.extui %8 : i1 to i32
    %c0_i32_4 = arith.constant 0 : i32
    %10 = arith.cmpi ne, %9, %c0_i32_4 : i32
    scf.if %10 {
      %c0 = arith.constant 0 : index
      %11 = memref.load %arg7[%c0] : memref<2xf32, #tpu.memory_space<smem>>
      %c1 = arith.constant 1 : index
      %12 = memref.load %arg7[%c1] : memref<2xf32, #tpu.memory_space<smem>>
      %cst = arith.constant 1.280000e+03 : f32
      %13 = arith.divf %11, %cst : f32
      %cst_5 = arith.constant 1.280000e+03 : f32
      %14 = arith.divf %12, %cst_5 : f32
      %15 = arith.mulf %13, %13 : f32
      %16 = arith.subf %14, %15 : f32
      %cst_6 = arith.constant 0.000000e+00 : f32
      %17 = arith.maximumf %16, %cst_6 : f32
      %18 = math.sqrt %17 : f32
      %cst_7 = arith.constant 1.000000e-10 : f32
      %19 = arith.addf %18, %cst_7 : f32
      %cst_8 = arith.constant 1.000000e+00 : f32
      %20 = arith.divf %cst_8, %19 : f32
      %c0_9 = arith.constant 0 : index
      %c0_10 = arith.constant 0 : index
      %21 = vector.load %arg2[%c0_9, %c0_10] : memref<16x32xf32, #tpu.memory_space<vmem>>, vector<16x32xf32>
      %c0_11 = arith.constant 0 : index
      %c0_12 = arith.constant 0 : index
      %22 = vector.load %arg3[%c0_11, %c0_12] : memref<32x128xf32, #tpu.memory_space<vmem>>, vector<32x128xf32>
      %23 = vector.broadcast %20 : f32 to vector<32x128xf32>
      %24 = arith.mulf %22, %23 : vector<32x128xf32>
      %c0_13 = arith.constant 0 : index
      %c0_14 = arith.constant 0 : index
      %25 = vector.load %arg4[%c0_13, %c0_14] : memref<1x128xf32, #tpu.memory_space<vmem>>, vector<1x128xf32>
      %26 = arith.mulf %13, %20 : f32
      %c0_15 = arith.constant 0 : index
      %c0_16 = arith.constant 0 : index
      %27 = vector.load %arg5[%c0_15, %c0_16] : memref<1x128xf32, #tpu.memory_space<vmem>>, vector<1x128xf32>
      %28 = vector.broadcast %26 : f32 to vector<1x128xf32>
      %29 = arith.mulf %28, %27 : vector<1x128xf32>
      %30 = arith.subf %25, %29 : vector<1x128xf32>
      %cst_17 = arith.constant dense<0.000000e+00> : vector<16x128xf32>
      %31 = tpu.matmul %21, %24, %cst_17 {dimension_numbers = #tpu.dot_dimension_numbers<[1], [0], [0], [1], [0, 0, 1, 1], [], []>} : vector<16x32xf32>, vector<32x128xf32>, vector<16x128xf32> -> vector<16x128xf32>
      %32 = vector.broadcast %30 : vector<1x128xf32> to vector<16x128xf32>
      %33 = arith.addf %31, %32 : vector<16x128xf32>
      %c0_18 = arith.constant 0 : index
      %c0_19 = arith.constant 0 : index
      %34 = vector.load %arg6[%c0_18, %c0_19] : memref<16x128xf32, #tpu.memory_space<vmem>>, vector<16x128xf32>
      tpu.vector_store %arg6[%c0_18, %c0_19], %33 {strides = array<i32>} : memref<16x128xf32, #tpu.memory_space<vmem>>, vector<16x128xf32>,
    } else {
    }
    return
  }
  func.func @transform_0(%arg0: i32, %arg1: i32) -> (i32, i32) {
    %c0_i32 = arith.constant 0 : i32
    %c0_i32_0 = arith.constant 0 : i32
    return %arg1, %c0_i32 : i32, i32
  }
  func.func @transform_1(%arg0: i32, %arg1: i32) -> (i32, i32) {
    %c0_i32 = arith.constant 0 : i32
    %c0_i32_0 = arith.constant 0 : i32
    %c0_i32_1 = arith.constant 0 : i32
    return %c0_i32, %c0_i32_0 : i32, i32
  }
  func.func @transform_2(%arg0: i32, %arg1: i32) -> (i32, i32) {
    %c0_i32 = arith.constant 0 : i32
    %c0_i32_0 = arith.constant 0 : i32
    %c0_i32_1 = arith.constant 0 : i32
    return %c0_i32, %c0_i32_0 : i32, i32
  }
  func.func @transform_3(%arg0: i32, %arg1: i32) -> (i32, i32) {
    %c0_i32 = arith.constant 0 : i32
    %c0_i32_0 = arith.constant 0 : i32
    %c0_i32_1 = arith.constant 0 : i32
    return %c0_i32, %c0_i32_0 : i32, i32
  }
  func.func @transform_4(%arg0: i32, %arg1: i32) -> (i32, i32) {
    %c0_i32 = arith.constant 0 : i32
    %c0_i32_0 = arith.constant 0 : i32
    return %arg1, %c0_i32 : i32, i32
  }
}

</mosaic_0001>

<bundles_post_ra>
// kernel: tpu_custom_call.1
= control target key start
LH: loop header
LB: loop body
LE: loop exit
PB: predicated region body
PF: predicated region fallthrough
CT: control target
= control target key end

     0   :  { %s911_s0 = inlined_call_operand.vmem [shape: f32[48,32], index: 0, kind: input, shape index: {}]   ;;  %s912_s1 = inlined_call_operand.vmem [shape: f32[32,128], index: 1, kind: input, shape index: {}]   ;;  %s913_s2 = inlined_call_operand.vmem [shape: f32[1,128], index: 2, kind: input, shape index: {}]   ;;  %s914_s3 = inlined_call_operand.vmem [shape: f32[1,128], index: 3, kind: input, shape index: {}]   ;;  %s915_s4 = inlined_call_operand.hbm [shape: f32[48,128], index: 4, kind: output, shape index: {}]  }
   0x1   :  { %917 = sst [smem:[#allocation7_spill]] %s911_s0 }
   0x2   :  { %9 = vsyncpa [#allocation4], 0 }
   0x3   :  { %11 = vsyncpa [#allocation4 + $0x1], 0  ;;  %s734_s15 = smov 0   ;;  %s736_s16 = smov 0  }
   0x4   :  { %s738_s17 = smov 0   ;;  %s740_s18 = smov 0  }
   0x5   :  { %s742_s19 = smov 0   ;;  %s744_s20 = smov 0  }
   0x6   :  { %s746_s21 = smov 0   ;;  %s748_s22 = smov 0  }
   0x7 LB: > { %s483_s23 = sadd.s32 4294967295, %s702_s22   ;;  %s484_s24 = sadd.s32 4294967294, %s702_s22   ;;  %s702_s22 = sphi %s748_s22, %s17_s22   ;;  %s698_s21 = sphi %s746_s21, %s930_s21   ;;  %s694_s20 = sphi %s744_s20, %s929_s20   ;;  %s690_s19 = sphi %s742_s19, %s928_s19   ;;  %s686_s18 = sphi %s740_s18, %s927_s18   ;;  %s682_s17 = sphi %s738_s17, %s926_s17   ;;  %s678_s16 = sphi %s736_s16, %s925_s16   ;;  %s674_s15 = sphi %s734_s15, %s924_s15  }
   0x8   : > { %s26_s25 = sadd.s32 1, %s694_s20  ;;  %s29_s26 = sadd.s32 1, %s698_s21 }
   0x9   : > { %p27_p0 = scmp.ge.s32.totalorder %s26_s25, 3  ;;  %s125_s27 = sadd.s32 1, %s682_s17 }
   0xa   : > { %p135_p1 = scmp.ne.s32.totalorder %s682_s17, %s678_s16  ;;  %p136_p2 = scmp.eq.s32.totalorder %s483_s23, 5 }
   0xb   : > { %s932_s25 = smov (%p27_p0, %s26_s25), 0  ;;  %s934_s26 = smov (!%p27_p0, %s29_s26), %s698_s21 }
   0xc   : > { %s122_s28 = ssub.s32 %s694_s20, %s932_s25  ;;  %p786_p3 = por %p136_p2, %p135_p1 }
   0xd   : > { %p31_p4 = scmp.ge.s32.totalorder %s934_s26, 2  ;;  %p123_p5 = scmp.eq.s32.totalorder %s122_s28, 0 }
   0xe   : > { %p141_p6 = scmp.ne.s32.totalorder %s678_s16, %s674_s15  ;;  %p142_p7 = scmp.eq.s32.totalorder %s484_s24, 5 }
   0xf   : > { %s936_s26 = smov (%p31_p4, %s934_s26), 0  ;;  %p487_p9 = scmp.ge.s32.totalorder %s702_s22, 1 }
  0x10   : > { %919 = sst [smem:[#allocation6_spill]] %s936_s26  ;;  %p797_p8 = por %p142_p7, %p141_p6 }
  0x11   : > { %s795_s30 = scalar_select %p123_p5, %s682_s17, %s125_s27  }
  0x12   : > { %p178_p10 = scmp.lt.s32.totalorder %s702_s22, 7 }
  0x14   : > { %p179_p11 = pnand %p487_p9, %p178_p10 }
  0x15   : > { %s916_s6 = sand.u32 (!%p179_p11), 1, %s678_s16   ;;  %s489_s7 = sshll.u32 (!%p179_p11), %s686_s18, 1 }
  0x16   : > { %182 = sbr.rel (%p179_p11) target bundleno = 629 (0x275), region = 36  ;;  %s488_s8 = sshll.u32 (!%p179_p11), %s916_s6, 4 }
  0x17   : > { %p205_p12 = scmp.lt.s32.totalorder (!%p179_p11), %s489_s7, 5  ;;  %p211_p13 = scmp.eq.s32.totalorder (!%p179_p11), %s690_s19, 0 }
  0x18   : > { %p212_p0 = scmp.eq.s32.totalorder (!%p179_p11), %s686_s18, 0  ;;  %s921_s0 = sld [smem:[#allocation7_spill]] (!%p179_p11) }
  0x19   : > { %s704_s13 = smov (!%p179_p11), 0.0   ;;  %s814_s14 = scalar_lea.vmem (!%p179_p11), [#allocation3], %s488_s8 }
  0x1a   : > { %p213_p1 = pnand (!%p179_p11), %p212_p0, %p211_p13  ;;  %p491_p2 = scmp.ne.s32.totalorder (!%p179_p11), %s690_s19, 0 }
  0x1b   : > { %s938_s7 = smov (!%p205_p12, %s489_s7), 5 }
  0x1c   : > { %s490_s9 = sshll.u32 %s938_s7, 3  ;;  %529 = sst [smem:[#allocation2]] (!%p213_p1), %s704_s13 }
  0x1d   : > { %530 = sst [smem:[#allocation2 + $0x1]] (!%p213_p1), %s704_s13  ;;  %223 = sbr.rel (%p491_p2) target bundleno = 245 (0xf5), region = 44 }
  0x1e   : > { %s812_s12 = scalar_lea.vmem %s921_s0, %s490_s9  ;;  %s226_s23 = sld [smem:[#allocation2]] (!%p491_p2) }
  0x1f   : > { %s492_s24 = sld [smem:[#allocation2 + $0x1]] (!%p491_p2) }
  0x22   : > { %v224_v0 = vld [vmem:[%s812_s12] sm:$0xff]  ;;  %v225_v1 = vld [vmem:[%s812_s12 + $0x8] sm:$0xff]  ;;  %vm227_vm0 = vcmask 261120  }
  0x23   : > { %v228_v2 = vsel %vm227_vm0, %v224_v0, 0.0  ;;  %v229_v3 = vsel %vm227_vm0, %v225_v1, 0.0  ;;  %v244_v4 = vmul.f32 %v224_v0, %v224_v0  ;;  %v245_v5 = vmul.f32 %v225_v1, %v225_v1 }
  0x24   : > { %v230_v6 = vadd.f32 %v229_v3, %v228_v2 }
  0x25   : > { %v246_v7 = vsel %vm227_vm0, %v244_v4, 0.0  ;;  %v247_v8 = vsel %vm227_vm0, %v245_v5, 0.0 }
  0x26   : > { %231 = vadd.xlane.f32.xlu0 %v230_v6  ;;  %v248_v9 = vadd.f32 %v247_v8, %v246_v7 }
  0x2a   : > { %249 = vadd.xlane.f32.xlu0 %v248_v9 }
  0xaf   : > { %v232_v10 = vpop.xlane.xlu0 %231 }
  0xb0   : > { %v233_v11 = vrot.slane %v232_v10, 4 }
  0xb2   : > { %v234_v12 = vadd.f32 %v233_v11, %v232_v10 }
  0xb3   : > { %v250_v13 = vpop.xlane.xlu0 %249 }
  0xb4   : > { %v235_v14 = vrot.slane %v234_v12, 2  ;;  %v251_v15 = vrot.slane %v250_v13, 4 }
  0xb6   : > { %v252_v16 = vadd.f32 %v251_v15, %v250_v13  ;;  %v236_v17 = vadd.f32 %v235_v14, %v234_v12 }
  0xb8   : > { %v253_v18 = vrot.slane %v252_v16, 2  ;;  %v237_v19 = vrot.slane %v236_v17, 1 }
  0xba   : > { %v254_v20 = vadd.f32 %v253_v18, %v252_v16  ;;  %v238_v21 = vadd.f32 %v237_v19, %v236_v17 }
  0xbc   : > { %520 = vpush %v238_v21  ;;  %v255_v22 = vrot.slane %v254_v20, 1 }
  0xbe   : > { %v256_v23 = vadd.f32 %v255_v22, %v254_v20 }
  0xc0   : > { %522 = vpush %v256_v23 }
  0xed   : > { %s521_s27 = spop %520 }
  0xee   : > { %s240_s28 = sadd.f32 %s521_s27, %s226_s23 }
  0xf0   : > { %242 = sst [smem:[#allocation2]] %s240_s28 }
  0xf1   : > { %s523_s7 = spop %522 }
  0xf2   : > { %s258_s8 = sadd.f32 %s523_s7, %s492_s24 }
  0xf4   : > { %260 = sst [smem:[#allocation2 + $0x1]] %s258_s8 }
  0xf5 PF: > { %p493_p4 = scmp.ne.s32.totalorder %s690_s19, 1 }
  0xf6   : > { %s265_s9 = sld [smem:[#allocation2]] (!%p493_p4)  ;;  %s705_s26 = smov (!%p493_p4), 0.0  }
  0xf7   : > { %264 = sbr.rel (%p493_p4) target bundleno = 604 (0x25c), region = 48  ;;  %s494_s10 = sld [smem:[#allocation2 + $0x1]] (!%p493_p4) }
  0xfc   : > { %s820_s11 = smul.f32 0.00078125, %s265_s9  ;;  %v289_v29 = vld [vmem:[%s812_s12] sm:$0xff]  ;;  %vm312_vm3 = vcmask 261120   ;;  %v294_v33 = vld [vmem:[%s912_s1 + $0x18] sm:$0xff]  ;;  %v293_v35 = vld [vmem:[%s912_s1 + $0x10] sm:$0xff]  ;;  %v307_v43 = vlaneseq }
  0xfd   : > { %s272_s13 = smul.f32 0.00078125, %s494_s10  ;;  %517 = vmatprep.mubr.msk.f32.mxu0 %vm312_vm3, %v289_v29  ;;  %v292_v37 = vld [vmem:[%s912_s1 + $0x8] sm:$0xff]  ;;  %v291_v39 = vld [vmem:[%s912_s1] sm:$0xff] }
  0xfe   : > { %s273_s6 = smul.f32 %s820_s11, %s820_s11  ;;  %v290_v42 = vld [vmem:[%s812_s12 + $0x8] sm:$0xff]  ;;  %v302_v44 = vld [vmem:[%s914_s3] sm:$0x1]  ;;  %v308_v47 = vshrl.u32 %v307_v43, 7 }
  0xff   : > { %v300_v48 = vld [vmem:[%s913_s2] sm:$0x1] }
 0x100   : > { %s274_s0 = ssub.f32 %s272_s13, %s273_s6  ;;  %v309_v50 = vsub.s32 0, %v308_v47 }
 0x102   : > { %s275_s23 = smax.f32 %s705_s26, %s274_s0 }
 0x103   : > { %v276_v24 = vstv %s275_s23 }
 0x104   : > { %606 = vrsqrt.f32 %v276_v24  ;;  %vm279_vm1 = vcmp.eq.f32.partialorder %v276_v24, inf  ;;  %v282_v26 = vand.u32 2147483648, %v276_v24  ;;  %vm281_vm2 = vcmp.eq.f32.partialorder %v276_v24, 0.0 }
 0x111   : > { %v607_v25 = vpop.eup %606 }
 0x112   : > { %v278_v27 = vmul.f32 %v607_v25, %v276_v24 }
 0x114   : > { %v280_v28 = vsel %vm279_vm1, %v276_v24, %v278_v27 }
 0x115   : > { %v283_v30 = vsel %vm281_vm2, %v282_v26, %v280_v28 }
 0x116   : > { %524 = vpush %v283_v30 }
 0x147   : > { %s525_s19 = spop %524 }
 0x148   : > { %s285_s24 = sadd.f32 1e-10, %s525_s19 }
 0x14a   : > { %v286_v31 = vstv %s285_s24 }
 0x14b   : > { %608 = vrcp.f32 %v286_v31 }
 0x158   : > { %v609_v32 = vpop.eup %608 }
 0x159   : > { %526 = vpush %v609_v32 }
 0x18a   : > { %s527_s6 = spop %526 }
 0x18b   : > { %v295_v34 = vstv %s527_s6  ;;  %s301_s13 = smul.f32 %s527_s6, %s820_s11 }
 0x18c   : > { %v299_v36 = vmul.f32 %v295_v34, %v294_v33  ;;  %v298_v38 = vmul.f32 %v295_v34, %v293_v35  ;;  %v297_v40 = vmul.f32 %v295_v34, %v292_v37  ;;  %v296_v41 = vmul.f32 %v295_v34, %v291_v39 }
 0x18d   : > { %v303_v45 = vstv %s301_s13 }
 0x18e   : > { %509 = vmatprep.subr.mxu0 %v299_v36  ;;  %v304_v46 = vmul.f32 %v303_v45, %v302_v44 }
 0x18f   : > { %510 = vmatpush3.msra.mxu0 %v299_v36 }
 0x190   : > { %511 = vmatprep.subr.mxu0 %v298_v38  ;;  %v305_v49 = vsub.f32 %v300_v48, %v304_v46 }
 0x191   : > { %512 = vmatpush3.msra.mxu0 %v298_v38 }
 0x192   : > { %513 = vmatprep.subr.mxu0 %v297_v40  ;;  %v310_v51 = vrot.slane %v305_v49, %v309_v50 }
 0x193   : > { %514 = vmatpush3.msra.mxu0 %v297_v40 }
 0x194   : > { %515 = vmatprep.subr.mxu0 %v296_v41 }
 0x195   : > { %516 = vmatpush3.msra.mxu0 %v296_v41 }
 0x196   : > { %518 = vmatmul.mubr.msk.f32.vlgmr.msra.gmra.mxu0 %vm312_vm3, %v290_v42 }
 0x256   : > { %v519_v52 = vpop.f32.mrf.mxu0 }
 0x257   : > { %v391_v53 = vadd.f32 %v519_v52, %v310_v51 }
 0x258   : > { %v385_v54 = vpop.f32.mrf.mxu0 }
 0x259   : > { %395 = vst [vmem:[%s814_s14 + $0x8] sm:$0xff] %v391_v53  ;;  %v386_v55 = vadd.f32 %v385_v54, %v310_v51 }
 0x25b   : > { %394 = vst [vmem:[%s814_s14] sm:$0xff] %v386_v55 }
 0x25c PF: > { %s502_s12 = sshll.u32 %s686_s18, 8  ;;  %s410_s27 = sshll.u32 %s814_s14, 4  ;;  %s856_s27 = int_to_ptr.vmem [resolvable:$true] %s410_s27 }
 0x25d   : > { %s853_s6 = scalar_lea.hbm %s915_s4, %s502_s12  ;;  %s922_s28 = sand.u32 1, %s678_s16  }
 0x25e   : > { %s860_s7 = scalar_lea.sflag [#allocation4], %s922_s28  ;;  %s610_s8 = scalar_lea.vmem %s856_s27, 256 }
 0x25f   : > { %p611_p5 = scmp.ne.s32.totalorder %s856_s27, %s610_s8  ;;  %s706_s18 = smov [#allocation3]  }
 0x260   : > { %s614_s9 = sshll.u32 %s706_s18, 4  ;;  %s615_s9 = int_to_ptr.vmem [resolvable:$false] %s614_s9 }
 0x261   : > { %p612_p6 = pnand %p611_p5, %p786_p3  ;;  %s616_s10 = scalar_lea.vmem %s615_s9, 512 }
 0x262   : > { %p617_p9 = scmp.lt.s32.totalorder %s856_s27, %s615_s9  ;;  %p618_p10 = scmp.lt.s32.totalorder %s616_s10, %s610_s8 }
 0x263   : > { %p613_p7 = pneg %p612_p6 }
 0x264   : > { %p619_p11 = por %p618_p10, %p617_p9 }
 0x266   : > { %p620_p12 = pnand %p619_p11, %p613_p7 }
 0x268   : > { %623 = shalt.err (!%p620_p12)
}
 0x269   : > { %s624_s14 = scalar_lea.hbm %s853_s6, 256  ;;  %s628_s19 = scalar_lea.hbm %s915_s4, 768 }
 0x26a   : > { %p625_p13 = scmp.ne.s32.totalorder %s853_s6, %s624_s14  ;;  %p629_p2 = scmp.lt.s32.totalorder %s853_s6, %s915_s4 }
 0x26b   : > { %p630_p4 = scmp.lt.s32.totalorder %s628_s19, %s624_s14 }
 0x26c   : > { %p626_p0 = pnand %p625_p13, %p786_p3 }
 0x26d   : > { %p631_p5 = por %p630_p4, %p629_p2 }
 0x26e   : > { %p627_p1 = pneg %p626_p0 }
 0x270   : > { %p632_p6 = pnand %p631_p5, %p627_p1 }
 0x272   : > { %635 = shalt.err (!%p632_p6)
}
 0x273   : > { %s707_s12 = smov 128   ;;  %s708_s11 = smov 8  }
 0x274   : > { %531 = dma.vmem_to_hbm [thread:$0]  (%p786_p3), %s856_s27, 256, %s853_s6, %s860_s7, %s707_s12, %s707_s12, %s708_s11  }
 0x275 PF: > { %p537_p7 = scmp.ge.s32.totalorder %s702_s22, 2  ;;  %s425_s26 = sand.u32 1, %s674_s15  }
 0x276   : > { %s426_s28 = scalar_lea.sflag [#allocation4], %s425_s26 }
 0x277   : > { %p534_p9 = pnand %p537_p7, %p797_p8 }
 0x279   : > { %p535_p10 = pneg %p534_p9 }
 0x27b   : > { %669 = dma.done.wait (%p535_p10), %s426_s28, 256  }
 0x27c   : > { %671 = vsyncadd (%p535_p10), %s426_s28, 4294967040  ;;  %s17_s22 = sadd.s32 1, %s702_s22   ;;  %s923_s29 = sld [smem:[#allocation6_spill]] }
 0x27d   : > { %p14_p11 = scmp.ge.s32.totalorder %s17_s22, 8   ;;  %s924_s15 = smov %s678_s16 }
 0x27e   : > { %s925_s16 = smov %s682_s17  ;;  %s926_s17 = smov %s795_s30 }
 0x27f   : > { %s927_s18 = smov %s694_s20  ;;  %s928_s19 = smov %s698_s21 }
 0x280   : > { %s929_s20 = smov %s932_s25  ;;  %16 = sbr.rel (!%p14_p11) target bundleno = 7 (0x7), region = 87 }
 0x282   : > { %s930_s21 = smov %s923_s29 }
 0x285   :  { %431 = vsyncpa [#allocation4], 1 }
 0x286   :  { %433 = vsyncpa [#allocation4 + $0x1], 1 }

</bundles_post_ra>
